<compile_context>
chip_gen: v6e
topology: v6e:2x2x1
jax: 0.10.0
libtpu: 0.0.40
codegen_flags: <defaults>
</compile_context>

<pallas_src>
import math

import jax
import jax.numpy as jnp
from jax.experimental import pallas as pl
from jax.experimental.pallas import tpu as pltpu

_LANE = 128
_SUBLANE = 8


def _round_up(x, m):
    return (x + m - 1) // m * m


def _pick_tile(dim, unit, target):
    """Largest multiple of `unit` that divides `dim` and is <= max(target, unit).

    Assumes `unit` divides `dim`.
    """
    best = unit
    q = dim // unit
    for k in range(1, q + 1):
        if q % k == 0 and k * unit <= target:
            best = k * unit
    return best


def _ds1x1_bn_kernel(x_ref, w_ref, b_ref, o_ref, acc_ref):
    # x_ref : (ci_tile, p_tile)   activations, pixels on the lane axis (dense)
    # w_ref : (co_tile, ci_tile)  BN-scale-folded 1x1 conv weights
    # b_ref : (co_tile, 1)        folded conv-bias + BN shift (f32)
    # o_ref : (co_tile, p_tile)   lane-dense output slab (NCHW layout)
    # acc_ref: (co_tile, p_tile)  f32 accumulator across the Cin (reduction) axis
    k = pl.program_id(3)

    @pl.when(k == 0)
    def _init():
        acc_ref[...] = jnp.zeros_like(acc_ref)

    acc_ref[...] += jnp.dot(w_ref[...], x_ref[...],
                            preferred_element_type=jnp.float32)

    @pl.when(k == pl.num_programs(3) - 1)
    def _finalize():
        # act = 'noop' -> identity epilogue (just the folded bias add)
        o_ref[...] = (acc_ref[...] + b_ref[...]).astype(o_ref.dtype)


def downsample1x1_forward(x_nchw, conv_w, conv_b, gamma, beta,
                          running_mean, running_var, *, stride=2, eps=1e-5,
                          p_tile_target=2048, co_tile_target=256,
                          ci_tile_target=512):
    """Equivalent of Downsample1x1Layer.forward (eval-mode BatchNorm), NCHW in/out."""
    N, Cin, H, W = x_nchw.shape
    Cout = conv_w.shape[0]                                # conv_w: (Cout, Cin, 1, 1)
    dtype = x_nchw.dtype

    # ---- stride-s subsample FIRST (a 1x1 conv only reads these pixels), stay NCHW.
    x_sub = x_nchw[:, :, ::stride, ::stride]              # (N, Cin, Ho, Wo)
    Ho, Wo = x_sub.shape[2], x_sub.shape[3]
    P = Ho * Wo
    x3 = x_sub.reshape(N, Cin, P)                         # contiguous -> free reshape

    # ---- pad the pixel (lane) axis to a multiple of 128 for dense vld/vst.
    P_pad = _round_up(P, _LANE)
    if P_pad != P:
        x3 = jnp.pad(x3, ((0, 0), (0, 0), (0, P_pad - P)))

    # ---- fold BN (inference) + conv bias:
    #   y = gamma * (W x + b - mean) / sqrt(var + eps) + beta
    #     = (scale[:,None] * W) x + ((b - mean) * scale + beta)
    scale = (gamma / jnp.sqrt(running_var + eps)).astype(jnp.float32)       # (Cout,)
    w_bn = (conv_w.reshape(Cout, Cin).astype(jnp.float32)
            * scale[:, None]).astype(dtype)                                 # (Cout, Cin)
    bias = ((conv_b - running_mean) * scale + beta).astype(jnp.float32)
    bias = bias.reshape(Cout, 1)                                            # (Cout, 1)
    # TODO(synk): on v6e/v7x, optionally cast x3 / w_bn to bf16 here (f32 accumulation
    # is kept via preferred_element_type) to halve HBM traffic if the caller allows it.

    # ---- tile selection (lane-dense, VMEM-budgeted; works for tiny and ResNet-scale C)
    p_tile = _pick_tile(P_pad, _LANE, p_tile_target)
    co_tile = (_pick_tile(Cout, _SUBLANE, co_tile_target)
               if Cout % _SUBLANE == 0 else Cout)
    if Cin % _LANE == 0 and Cin > ci_tile_target:
        ci_tile = _pick_tile(Cin, _LANE, ci_tile_target)
    else:
        ci_tile = Cin                                     # full-dim block (any Cin)

    # Reduction (Cin) axis last; all others parallel (shards across v7x's 2 TCs).
    grid = (N, Cout // co_tile, P_pad // p_tile, Cin // ci_tile)

    # VMEM budget: double-buffered blocks + f32 accumulator, with headroom,
    # capped so it stays safe on v7x (64 MiB physical VMEM).
    itemsize = x_nchw.dtype.itemsize
    need = (2 * itemsize * (ci_tile * p_tile + co_tile * ci_tile
                            + co_tile * p_tile + co_tile)
            + 4 * co_tile * p_tile)
    vmem_limit = int(min(48 * 2**20, max(32 * 2**20, 2 * need)))

    out3 = pl.pallas_call(
        _ds1x1_bn_kernel,
        out_shape=jax.ShapeDtypeStruct((N, Cout, P_pad), dtype),
        grid_spec=pltpu.PrefetchScalarGridSpec(
            num_scalar_prefetch=0,
            grid=grid,
            in_specs=[
                pl.BlockSpec((None, ci_tile, p_tile),
                             lambda n, co, p, ci: (n, ci, p)),
                pl.BlockSpec((co_tile, ci_tile),
                             lambda n, co, p, ci: (co, ci)),
                pl.BlockSpec((co_tile, 1),
                             lambda n, co, p, ci: (co, 0)),
            ],
            out_specs=pl.BlockSpec((None, co_tile, p_tile),
                                   lambda n, co, p, ci: (n, co, p)),
            scratch_shapes=[pltpu.VMEM((co_tile, p_tile), jnp.float32)],
        ),
        compiler_params=pltpu.CompilerParams(
            dimension_semantics=("parallel", "parallel", "parallel", "arbitrary"),
            vmem_limit_bytes=vmem_limit),
    )(x3, w_bn, bias)

    if P_pad != P:
        out3 = out3[:, :, :P]
    return out3.reshape(N, Cout, Ho, Wo)                  # already NCHW, no transpose


if __name__ == "__main__":
    key = jax.random.PRNGKey(0)
    k_x, k_w, k_b, k_g, k_be, k_m, k_v = jax.random.split(key, 7)

    N, Cin, H, W = 2, 4, 16, 16
    Cout = 8
    stride = 2
    eps = 1e-5

    x = jax.random.normal(k_x, (N, Cin, H, W), dtype=jnp.float32)

    # deterministic synthetic parameters (shapes match nn.Conv2d / nn.BatchNorm2d)
    conv_w = jax.random.normal(k_w, (Cout, Cin, 1, 1), dtype=jnp.float32) * 0.1
    conv_b = jax.random.normal(k_b, (Cout,), dtype=jnp.float32) * 0.1
    gamma = 1.0 + 0.1 * jax.random.normal(k_g, (Cout,), dtype=jnp.float32)
    beta = 0.1 * jax.random.normal(k_be, (Cout,), dtype=jnp.float32)
    running_mean = 0.1 * jax.random.normal(k_m, (Cout,), dtype=jnp.float32)
    running_var = 1.0 + 0.1 * jax.nn.sigmoid(
        jax.random.normal(k_v, (Cout,), dtype=jnp.float32))

    y = downsample1x1_forward(x, conv_w, conv_b, gamma, beta,
                              running_mean, running_var, stride=stride, eps=eps)
    jax.block_until_ready(y)

    # reference in plain JAX (eval-mode BN applied to the 1x1 strided conv)
    inv_std = gamma / jnp.sqrt(running_var + eps)
    x_sub = x[:, :, ::stride, ::stride]
    ref = jnp.einsum("nchw,oc->nohw", x_sub, conv_w.reshape(Cout, Cin))
    ref = ((ref + conv_b[None, :, None, None] - running_mean[None, :, None, None])
           * inv_std[None, :, None, None] + beta[None, :, None, None])

    assert y.shape == (N, Cout, H // stride, W // stride)
    assert jnp.max(jnp.abs(y - ref)) < 1e-4

    print("KERNEL_OK")
</pallas_src>

<mosaic_0001>
module attributes {stable_mosaic.version = 11 : i64} {
  func.func @_ds1x1_bn_kernel(%arg0: i32, %arg1: i32, %arg2: i32, %arg3: i32, %arg4: memref<1x4x128xf32, #tpu.memory_space<vmem>>, %arg5: memref<8x4xf32, #tpu.memory_space<vmem>>, %arg6: memref<8x1xf32, #tpu.memory_space<vmem>>, %arg7: memref<1x8x128xf32, #tpu.memory_space<vmem>>, %arg8: memref<8x128xf32, #tpu.memory_space<vmem>>) attributes {dimension_semantics = [#tpu.dimension_semantics<parallel>, #tpu.dimension_semantics<parallel>, #tpu.dimension_semantics<parallel>, #tpu.dimension_semantics<arbitrary>], iteration_bounds = array<i64: 2, 1, 1, 1>, scalar_prefetch = 0 : i64, scratch_operands = 1 : i64, tpu.core_type = #tpu.core_type<tc>, window_params = [{transform_indices = @transform_0, window_bounds = array<i64: 1, 4, 128>}, {transform_indices = @transform_1, window_bounds = array<i64: 8, 4>}, {transform_indices = @transform_2, window_bounds = array<i64: 8, 1>}, {transform_indices = @transform_3, window_bounds = array<i64: 1, 8, 128>}]} {
    %c0_i32 = arith.constant 0 : i32
    %0 = arith.cmpi eq, %arg3, %c0_i32 : i32
    %1 = arith.extui %0 : i1 to i32
    %c0_i32_0 = arith.constant 0 : i32
    %2 = arith.cmpi ne, %1, %c0_i32_0 : i32
    scf.if %2 {
      %cst_11 = arith.constant 0.000000e+00 : f32
      %13 = vector.broadcast %cst_11 : f32 to vector<8x128xf32>
      %c0_12 = arith.constant 0 : index
      %c0_13 = arith.constant 0 : index
      %14 = vector.load %arg8[%c0_12, %c0_13] : memref<8x128xf32, #tpu.memory_space<vmem>>, vector<8x128xf32>
      tpu.vector_store %arg8[%c0_12, %c0_13], %13 {strides = array<i32>} : memref<8x128xf32, #tpu.memory_space<vmem>>, vector<8x128xf32>,
    } else {
    }
    %c0 = arith.constant 0 : index
    %c0_1 = arith.constant 0 : index
    %3 = vector.load %arg8[%c0, %c0_1] : memref<8x128xf32, #tpu.memory_space<vmem>>, vector<8x128xf32>
    %c0_2 = arith.constant 0 : index
    %c0_3 = arith.constant 0 : index
    %4 = vector.load %arg5[%c0_2, %c0_3] : memref<8x4xf32, #tpu.memory_space<vmem>>, vector<8x4xf32>
    %c0_4 = arith.constant 0 : index
    %c0_5 = arith.constant 0 : index
    %c0_6 = arith.constant 0 : index
    %5 = vector.load %arg4[%c0_4, %c0_5, %c0_6] : memref<1x4x128xf32, #tpu.memory_space<vmem>>, vector<1x4x128xf32>
    %6 = vector.shape_cast %5 : vector<1x4x128xf32> to vector<4x128xf32>
    %cst = arith.constant dense<0.000000e+00> : vector<8x128xf32>
    %7 = tpu.matmul %4, %6, %cst {dimension_numbers = #tpu.dot_dimension_numbers<[1], [0], [0], [1], [0, 0, 1, 1], [], []>} : vector<8x4xf32>, vector<4x128xf32>, vector<8x128xf32> -> vector<8x128xf32>
    %8 = arith.addf %3, %7 : vector<8x128xf32>
    %c0_7 = arith.constant 0 : index
    %c0_8 = arith.constant 0 : index
    %9 = vector.load %arg8[%c0_7, %c0_8] : memref<8x128xf32, #tpu.memory_space<vmem>>, vector<8x128xf32>
    tpu.vector_store %arg8[%c0_7, %c0_8], %8 {strides = array<i32>} : memref<8x128xf32, #tpu.memory_space<vmem>>, vector<8x128xf32>,
    %c0_i32_9 = arith.constant 0 : i32
    %10 = arith.cmpi eq, %arg3, %c0_i32_9 : i32
    %11 = arith.extui %10 : i1 to i32
    %c0_i32_10 = arith.constant 0 : i32
    %12 = arith.cmpi ne, %11, %c0_i32_10 : i32
    scf.if %12 {
      %c0_11 = arith.constant 0 : index
      %c0_12 = arith.constant 0 : index
      %13 = vector.load %arg8[%c0_11, %c0_12] : memref<8x128xf32, #tpu.memory_space<vmem>>, vector<8x128xf32>
      %c0_13 = arith.constant 0 : index
      %c0_14 = arith.constant 0 : index
      %14 = vector.load %arg6[%c0_13, %c0_14] : memref<8x1xf32, #tpu.memory_space<vmem>>, vector<8x1xf32>
      %15 = vector.broadcast %14 : vector<8x1xf32> to vector<8x128xf32>
      %16 = arith.addf %13, %15 : vector<8x128xf32>
      %c0_15 = arith.constant 0 : index
      %c0_16 = arith.constant 0 : index
      %c0_17 = arith.constant 0 : index
      %17 = vector.load %arg7[%c0_15, %c0_16, %c0_17] : memref<1x8x128xf32, #tpu.memory_space<vmem>>, vector<1x8x128xf32>
      %18 = vector.shape_cast %17 : vector<1x8x128xf32> to vector<8x128xf32>
      %19 = vector.shape_cast %16 : vector<8x128xf32> to vector<1x8x128xf32>
      tpu.vector_store %arg7[%c0_15, %c0_16, %c0_17], %19 {strides = array<i32>} : memref<1x8x128xf32, #tpu.memory_space<vmem>>, vector<1x8x128xf32>,
    } else {
    }
    return
  }
  func.func @transform_0(%arg0: i32, %arg1: i32, %arg2: i32, %arg3: i32) -> (i32, i32, i32) {
    %c0_i32 = arith.constant 0 : i32
    return %arg0, %arg3, %arg2 : i32, i32, i32
  }
  func.func @transform_1(%arg0: i32, %arg1: i32, %arg2: i32, %arg3: i32) -> (i32, i32) {
    %c0_i32 = arith.constant 0 : i32
    return %arg1, %arg3 : i32, i32
  }
  func.func @transform_2(%arg0: i32, %arg1: i32, %arg2: i32, %arg3: i32) -> (i32, i32) {
    %c0_i32 = arith.constant 0 : i32
    %c0_i32_0 = arith.constant 0 : i32
    return %arg1, %c0_i32 : i32, i32
  }
  func.func @transform_3(%arg0: i32, %arg1: i32, %arg2: i32, %arg3: i32) -> (i32, i32, i32) {
    %c0_i32 = arith.constant 0 : i32
    return %arg0, %arg1, %arg2 : i32, i32, i32
  }
}

</mosaic_0001>

<bundles_post_ra>
// kernel: tpu_custom_call.1
= control target key start
LH: loop header
LB: loop body
LE: loop exit
PB: predicated region body
PF: predicated region fallthrough
CT: control target
= control target key end

     0   :  { %8 = vsyncpa [#allocation4], 0  ;;  %s787_s0 = inlined_call_operand.vmem [shape: f32[2,4,128], index: 0, kind: input, shape index: {}]   ;;  %s788_s1 = inlined_call_operand.vmem [shape: f32[8,4], index: 1, kind: input, shape index: {}]   ;;  %s789_s2 = inlined_call_operand.vmem [shape: f32[8,1], index: 2, kind: input, shape index: {}]   ;;  %s790_s3 = inlined_call_operand.hbm [shape: f32[2,8,128], index: 3, kind: output, shape index: {}]  }
   0x1   :  { %10 = vsyncpa [#allocation4 + $0x1], 0  ;;  %s676_s12 = smov 0   ;;  %s678_s13 = smov 0  }
   0x2   :  { %s680_s14 = smov 0   ;;  %s682_s15 = smov 0  }
   0x3   :  { %s684_s16 = smov 0   ;;  %s686_s17 = smov 0  }
   0x4 LB: > { %s493_s18 = sadd.s32 4294967295, %s650_s17   ;;  %s494_s19 = sadd.s32 4294967294, %s650_s17   ;;  %s650_s17 = sphi %s686_s17, %s16_s17   ;;  %s646_s16 = sphi %s684_s16, %s797_s16   ;;  %s642_s15 = sphi %s682_s15, %s796_s15   ;;  %s638_s14 = sphi %s680_s14, %s795_s14   ;;  %s634_s13 = sphi %s678_s13, %s794_s13   ;;  %s630_s12 = sphi %s676_s12, %s793_s12  }
   0x5   : > { %s42_s20 = sadd.s32 1, %s646_s16  ;;  %s137_s21 = sadd.s32 1, %s638_s14 }
   0x6   : > { %p44_p0 = scmp.ge.s32.totalorder %s42_s20, 2  ;;  %p147_p1 = scmp.ne.s32.totalorder %s638_s14, %s634_s13 }
   0x7   : > { %p148_p2 = scmp.eq.s32.totalorder %s493_s18, 1  ;;  %p153_p3 = scmp.ne.s32.totalorder %s634_s13, %s630_s12 }
   0x8   : > { %s799_s20 = smov (%p44_p0, %s42_s20), 0  ;;  %p154_p5 = scmp.eq.s32.totalorder %s494_s19, 1 }
   0x9   : > { %p716_p4 = por %p148_p2, %p147_p1  ;;  %s130_s23 = ssub.s32 %s646_s16, %s799_s20 }
   0xa   : > { %p499_p6 = scmp.ge.s32.totalorder %s650_s17, 1  ;;  %p135_p7 = scmp.eq.s32.totalorder %s130_s23, 0 }
   0xb   : > { %p723_p8 = por %p154_p5, %p153_p3  ;;  %p202_p9 = scmp.lt.s32.totalorder %s650_s17, 3 }
   0xc   : > { %s729_s25 = scalar_select %p135_p7, %s638_s14, %s137_s21  }
   0xd   : > { %p203_p10 = pnand %p499_p6, %p202_p9 }
   0xe   : > { %p242_p11 = scmp.lt.s32.totalorder (!%p203_p10), %s642_s15, 1  ;;  %s239_s8 = sand.u32 (!%p203_p10), 1, %s634_s13  }
   0xf   : > { %206 = sbr.rel (%p203_p10) target bundleno = 234 (0xea), region = 32  ;;  %s500_s9 = sshll.u32 (!%p203_p10), %s239_s8, 3 }
  0x10   : > { %s505_s10 = sshll.u32 (!%p203_p10), %s642_s15, 7  ;;  %s241_s11 = scalar_lea.vmem (!%p203_p10), [#allocation3], %s500_s9 }
  0x11   : > { %s379_s18 = sshll.u32 (!%p203_p10), %s241_s11, 4  ;;  %s747_s23 = scalar_lea.hbm (!%p203_p10), %s790_s3, %s505_s10  ;;  %s380_s18 = int_to_ptr.vmem [resolvable:$true] %s379_s18 }
  0x12   : > { %s364_s26 = scalar_lea.sflag (!%p203_p10), [#allocation4], %s239_s8  ;;  %s574_s27 = scalar_lea.vmem (!%p203_p10), %s380_s18, 128 }
  0x13   : > { %p575_p12 = scmp.ne.s32.totalorder (!%p203_p10), %s380_s18, %s574_s27 }
  0x14   : > { %v652_v0 = vmov 0.0   ;;  %vm653_vm0 = vmmov 0   ;;  %v355_v1 = vld [vmem:[%s789_s2] sm:$0xff]  ;;  %s243_s28 = scalar_select %p242_p11, %s642_s15, 1  ;;  %v654_v2 = vmov 0   ;;  %vm275_vm1 = vcmask 1043456  }
  0x15   : > { %510 = vmatprep.subr.mxu0 %v652_v0  ;;  %512 = vmatprep.mubr.msk.f32.mxu0 %vm653_vm0, %v652_v0  ;;  %v269_v3 = vld [vmem:[%s788_s1] sm:$0xff]  ;;  %vm271_vm2 = vcmask 31744   ;;  %p576_p13 = pnand %p575_p12, %p716_p4 }
  0x16   : > { %573 = vset.pattern.permute.xlu0 %v654_v2  ;;  %s501_s29 = sshll.u32 %s243_s28, 2  ;;  %s655_s28 = smov [#allocation3]  }
  0x17   : > { %358 = vperm.xlu0 %573, %v355_v1   ;;  %s251_s5 = scalar_lea.vmem %s787_s0, %s501_s29  ;;  %p577_p0 = pneg %p576_p13 }
  0x18   : > { %v270_v4 = vld [vmem:[%s251_s5] sm:$0xf]  ;;  %s578_s15 = sshll.u32 %s655_s28, 4  ;;  %s579_s15 = int_to_ptr.vmem [resolvable:$false] %s578_s15 }
  0x19   : > { %511 = vmatpush3.msk.msra.mxu0 %vm275_vm1, %v270_v4  ;;  %s580_s29 = scalar_lea.vmem %s579_s15, 256  ;;  %p581_p1 = scmp.lt.s32.totalorder %s380_s18, %s579_s15 }
  0x1a   : > { %513 = vmatmul.mubr.msk.f32.vlgmr.msra.gmra.mxu0 %vm271_vm2, %v269_v3  ;;  %p582_p2 = scmp.lt.s32.totalorder %s580_s29, %s574_s27 }
  0x1c   : > { %p583_p3 = por %p582_p2, %p581_p1 }
  0x1e   : > { %p584_p5 = pnand %p583_p3, %p577_p0 }
  0x92   : > { %v359_v5 = vpop.permute.xlu0 %358 }
  0xda   : > { %v345_v6 = vpop.f32.mrf.mxu0 }
  0xdb   : > { %v361_v7 = vadd.f32 %v359_v5, %v345_v6 }
  0xdc   : > { %v514_v8 = vpop.f32.mrf.mxu0 }
  0xdd   : > { %362 = vst [vmem:[%s241_s11] sm:$0xff] %v361_v7 }
  0xde   : > { %587 = shalt.err (!%p584_p5)
}
  0xdf   : > { %s588_s30 = scalar_lea.hbm %s747_s23, 128  ;;  %s592_s6 = scalar_lea.hbm %s790_s3, 256 }
  0xe0   : > { %p589_p6 = scmp.ne.s32.totalorder %s747_s23, %s588_s30  ;;  %p593_p10 = scmp.lt.s32.totalorder %s747_s23, %s790_s3 }
  0xe1   : > { %p594_p11 = scmp.lt.s32.totalorder %s592_s6, %s588_s30 }
  0xe2   : > { %p590_p7 = pnand %p589_p6, %p716_p4 }
  0xe3   : > { %p595_p12 = por %p594_p11, %p593_p10 }
  0xe4   : > { %p591_p9 = pneg %p590_p7 }
  0xe6   : > { %p596_p13 = pnand %p595_p12, %p591_p9 }
  0xe8   : > { %599 = shalt.err (!%p596_p13)
}
  0xe9   : > { %515 = dma.vmem_to_hbm [thread:$0]  (%p716_p4), %s380_s18, 128, %s747_s23, %s364_s26  }
  0xea PF: > { %p521_p0 = scmp.ge.s32.totalorder %s650_s17, 2  ;;  %s391_s9 = sand.u32 1, %s630_s12  }
  0xeb   : > { %s392_s10 = scalar_lea.sflag [#allocation4], %s391_s9 }
  0xec   : > { %p518_p1 = pnand %p521_p0, %p723_p8 }
  0xee   : > { %p519_p2 = pneg %p518_p1 }
  0xf0   : > { %625 = dma.done.wait (%p519_p2), %s392_s10, 128  }
  0xf1   : > { %627 = vsyncadd (%p519_p2), %s392_s10, 4294967168  ;;  %s16_s17 = sadd.s32 1, %s650_s17   ;;  %s793_s12 = smov %s634_s13 }
  0xf2   : > { %p13_p3 = scmp.ge.s32.totalorder %s16_s17, 4   ;;  %s794_s13 = smov %s638_s14 }
  0xf3   : > { %s795_s14 = smov %s729_s25  ;;  %s796_s15 = smov %s646_s16 }
  0xf4   : > { %s797_s16 = smov %s799_s20  ;;  %15 = sbr.rel (!%p13_p3) target bundleno = 4 (0x4), region = 81 }
  0xf9   :  { %397 = vsyncpa [#allocation4], 1 }
  0xfa   :  { %399 = vsyncpa [#allocation4 + $0x1], 1 }

</bundles_post_ra>
